<compile_context>
chip_gen: v5e
topology: v5e:2x2
jax: 0.10.0
libtpu: 0.0.40
codegen_flags: <defaults>
</compile_context>

<pallas_src>
import functools

import jax
import jax.numpy as jnp
import numpy as np
from jax import lax
from jax.experimental import pallas as pl
from jax.experimental.pallas import tpu as pltpu


def _round_up(x, m):
    return ((x + m - 1) // m) * m


# ---------------------------------------------------------------------------
# Kernel 1: m = x @ T_flat   (T_flat = T.reshape(F, O*K); lane index = o*K + k)
# ---------------------------------------------------------------------------
def _matmul_kernel(x_ref, t_ref, m_ref):
    m_ref[...] = jnp.dot(x_ref[...], t_ref[...],
                         preferred_element_type=jnp.float32)


# ---------------------------------------------------------------------------
# Kernel 2: pairwise exp(-norm) accumulation, tiled over (j, i); i = reduction.
# Per-i-row loop keeps intermediates small; K-sum goes to the MXU via a 0/1
# pooling matrix so the exp/accumulate tail is only O lanes wide.
# ---------------------------------------------------------------------------
def _pairwise_kernel(m_i_ref, m_j_ref, pool_ref, o_ref, acc_ref, *,
                     kind, tile_i, kernel_dims, n_valid, need_mask):
    i_step = pl.program_id(1)

    @pl.when(i_step == 0)
    def _():
        acc_ref[...] = jnp.zeros_like(acc_ref)

    m_j = m_j_ref[...]            # (tile_j, O*K) f32 -- resident across the row loop
    pool = pool_ref[...]          # (O*K, O) 0/1 pooling matrix (sum over K)
    base = i_step * tile_i

    def body(r, acc):
        row = m_i_ref[pl.ds(r, 1), :]              # (1, O*K), broadcast over sublanes
        d = m_j - row                              # (tile_j, O*K)   VPU
        if kind == 'L2 Norm':
            diff = d * d
        else:                                      # 'L1 Norm' / 'identical'
            diff = jnp.abs(d)
        if kernel_dims == 1:
            red = diff                             # already (tile_j, O)
        else:                                      # K-sum on the (idle) MXU
            red = jnp.dot(diff, pool, preferred_element_type=jnp.float32)
        if kind == 'identical':
            e = jnp.exp(-red * 100.0)              # (tile_j, O)   EUP, width O only
        else:
            e = jnp.exp(-red)
        if need_mask:                              # drop zero-padded batch rows
            e = jnp.where(base + r < n_valid, e, 0.0)
        return acc + e

    acc_ref[...] = lax.fori_loop(0, tile_i, body, acc_ref[...], unroll=2)

    @pl.when(i_step == pl.num_programs(1) - 1)
    def _():
        o_ref[...] = (acc_ref[...] - 1.0).astype(o_ref.dtype)


def minibatch_discrimination(x, T, *, minibatch_kind='L1 Norm', mean=False):
    """x: (N, in_features) f32.  T: (in_features, out_features, kernel_dims) f32."""
    if minibatch_kind == 'Cosine':
        # TODO(synk): Cosine branch (per-pair cosine similarity over K) not ported.
        raise NotImplementedError("Cosine Minibatch_kind not implemented")

    n, in_features = x.shape
    f2, out_features, kernel_dims = T.shape
    assert f2 == in_features
    ok = out_features * kernel_dims

    x32 = x.astype(jnp.float32)
    t_flat = T.reshape(in_features, ok).astype(jnp.float32)   # same layout as torch .view

    # ---- tile selection + batch padding (no unbounded fallback tiles) --------
    n8 = _round_up(n, 8)
    if n8 <= 128:
        # Split j into >=2 tiles when cleanly possible so both v7x TCs get work.
        tile_j = n8 // 2 if (n8 >= 16 and n8 % 16 == 0) else n8
        tile_i = tile_j
        n_pad = n8
    else:
        tile_j = 128
        tile_i = 64          # <=64 keeps the per-tile footprint v7x(64 MiB)-safe
        n_pad = _round_up(n, 128)

    if n_pad != n:
        x_p = jnp.zeros((n_pad, in_features), jnp.float32).at[:n].set(x32)
    else:
        x_p = x32

    # ---- Kernel 1: m = x @ T_flat (computed once, reused by every pair tile) --
    tile_n = min(128, n_pad)
    m = pl.pallas_call(
        _matmul_kernel,
        out_shape=jax.ShapeDtypeStruct((n_pad, ok), jnp.float32),
        grid=(n_pad // tile_n,),
        in_specs=[pl.BlockSpec((tile_n, in_features), lambda i: (i, 0)),
                  pl.BlockSpec((in_features, ok), lambda i: (0, 0))],
        out_specs=pl.BlockSpec((tile_n, ok), lambda i: (i, 0)),
        compiler_params=pltpu.CompilerParams(
            dimension_semantics=("parallel",),
            vmem_limit_bytes=32 * 1024 * 1024),
        cost_estimate=pl.CostEstimate(
            flops=2 * n_pad * in_features * ok,
            transcendentals=0,
            bytes_accessed=4 * (n_pad * in_features + in_features * ok + n_pad * ok)),
    )(x_p, t_flat)

    # 0/1 pooling matrix: pool[o*K + k, o] = 1  ->  diff @ pool sums over K.
    pool = jnp.repeat(jnp.eye(out_features, dtype=jnp.float32), kernel_dims, axis=0)

    kernel = functools.partial(
        _pairwise_kernel, kind=minibatch_kind, tile_i=tile_i,
        kernel_dims=kernel_dims, n_valid=n, need_mask=(n_pad != n))

    j_tiles = n_pad // tile_j
    i_tiles = n_pad // tile_i
    o_pad = pl.pallas_call(
        kernel,
        out_shape=jax.ShapeDtypeStruct((n_pad, out_features), jnp.float32),
        grid=(j_tiles, i_tiles),                  # i (reduction) innermost
        in_specs=[pl.BlockSpec((tile_i, ok), lambda jt, it: (it, 0)),
                  pl.BlockSpec((tile_j, ok), lambda jt, it: (jt, 0)),
                  pl.BlockSpec((ok, out_features), lambda jt, it: (0, 0))],
        out_specs=pl.BlockSpec((tile_j, out_features), lambda jt, it: (jt, 0)),
        scratch_shapes=[pltpu.VMEM((tile_j, out_features), jnp.float32)],
        compiler_params=pltpu.CompilerParams(
            dimension_semantics=("parallel", "arbitrary"),
            vmem_limit_bytes=48 * 1024 * 1024),   # within v7x's 64 MiB physical VMEM
        cost_estimate=pl.CostEstimate(
            flops=n_pad * n_pad * ok * (3 + 2 * out_features),
            transcendentals=n_pad * n_pad * out_features,
            # m_j + pool are resident across the inner i axis; only m_i is re-read.
            bytes_accessed=4 * (n_pad * ok * (1 + j_tiles)
                                + ok * out_features
                                + n_pad * out_features)),
    )(m, m, pool)

    o_b = o_pad[:n]                               # drop padded batch rows
    if mean:
        o_b = o_b / (n - 1)
    # torch.cat([x, o_b], dim=1) -- done in the wrapper, x never re-written in-kernel.
    return jnp.concatenate([x, o_b.astype(x.dtype)], axis=1)


def minibatch_discrimination_ref(x, T):
    """Pure-JAX reference mirroring the PyTorch forward (L1 Norm, mean=False)."""
    n, f = x.shape
    _, o, k = T.shape
    m = (x @ T.reshape(f, o * k)).reshape(n, o, k)
    M = m[None, :, :, :]           # (1, N, O, K)
    M_T = m[:, None, :, :]         # (N, 1, O, K)
    norm = jnp.abs(M - M_T).sum(axis=3)
    expnorm = jnp.exp(-norm)
    o_b = expnorm.sum(axis=0) - 1.0
    return jnp.concatenate([x, o_b], axis=1)


if __name__ == "__main__":
    # Small, module-consistent shapes (O*K = 128 -> lane-dense diff stage).
    batch = 8
    in_features = 32
    out_features = 16
    kernel_dims = 8

    key = jax.random.PRNGKey(0)
    kx, kt = jax.random.split(key)
    x = jax.random.normal(kx, (batch, in_features), dtype=jnp.float32)
    # init.normal(self.T, 0, 1) -> standard normal parameter, deterministic here.
    T = jax.random.normal(kt, (in_features, out_features, kernel_dims),
                          dtype=jnp.float32)

    out = minibatch_discrimination(x, T)
    out = jax.block_until_ready(out)

    ref = jax.block_until_ready(minibatch_discrimination_ref(x, T))
    np.testing.assert_allclose(np.asarray(out), np.asarray(ref),
                               rtol=1e-4, atol=1e-5)
    assert out.shape == (batch, in_features + out_features)

    print("KERNEL_OK")
</pallas_src>

<mosaic_0001>
module attributes {stable_mosaic.version = 11 : i64} {
  func.func @_matmul_kernel(%arg0: i32, %arg1: memref<8x32xf32, #tpu.memory_space<vmem>>, %arg2: memref<32x128xf32, #tpu.memory_space<vmem>>, %arg3: memref<8x128xf32, #tpu.memory_space<vmem>>) attributes {dimension_semantics = [#tpu.dimension_semantics<parallel>], iteration_bounds = array<i64: 1>, scalar_prefetch = 0 : i64, scratch_operands = 0 : i64, tpu.core_type = #tpu.core_type<tc>, window_params = [{transform_indices = @transform_0, window_bounds = array<i64: 8, 32>}, {pipeline_mode = #tpu.pipeline_mode<synchronous>, transform_indices = @transform_1, window_bounds = array<i64: 32, 128>}, {transform_indices = @transform_2, window_bounds = array<i64: 8, 128>}]} {
    %c0 = arith.constant 0 : index
    %c0_0 = arith.constant 0 : index
    %0 = vector.load %arg1[%c0, %c0_0] : memref<8x32xf32, #tpu.memory_space<vmem>>, vector<8x32xf32>
    %c0_1 = arith.constant 0 : index
    %c0_2 = arith.constant 0 : index
    %1 = vector.load %arg2[%c0_1, %c0_2] : memref<32x128xf32, #tpu.memory_space<vmem>>, vector<32x128xf32>
    %cst = arith.constant dense<0.000000e+00> : vector<8x128xf32>
    %2 = tpu.matmul %0, %1, %cst {dimension_numbers = #tpu.dot_dimension_numbers<[1], [0], [0], [1], [0, 0, 1, 1], [], []>} : vector<8x32xf32>, vector<32x128xf32>, vector<8x128xf32> -> vector<8x128xf32>
    %c0_3 = arith.constant 0 : index
    %c0_4 = arith.constant 0 : index
    %3 = vector.load %arg3[%c0_3, %c0_4] : memref<8x128xf32, #tpu.memory_space<vmem>>, vector<8x128xf32>
    tpu.vector_store %arg3[%c0_3, %c0_4], %2 {strides = array<i32>} : memref<8x128xf32, #tpu.memory_space<vmem>>, vector<8x128xf32>,
    return
  }
  func.func @transform_0(%arg0: i32) -> (i32, i32) {
    %c0_i32 = arith.constant 0 : i32
    %c0_i32_0 = arith.constant 0 : i32
    return %arg0, %c0_i32 : i32, i32
  }
  func.func @transform_1(%arg0: i32) -> (i32, i32) {
    %c0_i32 = arith.constant 0 : i32
    %c0_i32_0 = arith.constant 0 : i32
    %c0_i32_1 = arith.constant 0 : i32
    return %c0_i32, %c0_i32_0 : i32, i32
  }
  func.func @transform_2(%arg0: i32) -> (i32, i32) {
    %c0_i32 = arith.constant 0 : i32
    %c0_i32_0 = arith.constant 0 : i32
    return %arg0, %c0_i32 : i32, i32
  }
}

</mosaic_0001>

<bundles_post_ra>
// kernel: tpu_custom_call.1
= control target key start
LH: loop header
LB: loop body
LE: loop exit
PB: predicated region body
PF: predicated region fallthrough
CT: control target
= control target key end

     0   :  { %7 = vsyncpa [#allocation3], 0  ;;  %s203_s0 = inlined_call_operand.hbm [shape: f32[8,32], index: 0, kind: input, shape index: {}]   ;;  %s204_s1 = inlined_call_operand.hbm [shape: f32[32,128], index: 1, kind: input, shape index: {}]   ;;  %s205_s2 = inlined_call_operand.hbm [shape: f32[8,128], index: 2, kind: output, shape index: {}]  }
   0x1   :  { %8 = vsyncpa [#allocation6], 0 }
   0x2   :  { %9 = vsyncpa [#allocation4], 0  ;;  %s15_s11 = sshll.u32 %s203_s0, 4  ;;  %s174_s12 = smov [#allocation2]   ;;  %s16_s11 = int_to_ptr.hbm [resolvable:$true] %s15_s11 }
   0x3   :  { %s17_s13 = sshll.u32 %s174_s12, 4  ;;  %s25_s16 = sshll.u32 %s204_s1, 4  ;;  %s18_s13 = int_to_ptr.vmem [resolvable:$true] %s17_s13  ;;  %s26_s16 = int_to_ptr.hbm [resolvable:$true] %s25_s16 }
   0x4   :  { %20 = dma.hbm_to_vmem [thread:$0]  %s16_s11, 128, %s18_s13, [#allocation3]  }
   0x5   :  { %s175_s17 = smov [#allocation5]   ;;  %s176_s19 = smov 128  }
   0x6   :  { %s27_s18 = sshll.u32 %s175_s17, 4  ;;  %s177_s20 = smov 8   ;;  %s28_s18 = int_to_ptr.vmem [resolvable:$true] %s27_s18 }
   0x7   :  { %33 = dma.hbm_to_vmem [thread:$0]  %s26_s16, 512, %s28_s18, [#allocation6], %s176_s19, %s176_s19, %s177_s20  }
   0x8   :  { %168 = dma.done.wait [#allocation3], 128  }
   0x9   :  { %169 = vsyncadd [#allocation3], 4294967168 }
   0xa   :  { %170 = dma.done.wait [#allocation6], 512  }
   0xb   :  { %171 = vsyncadd [#allocation6], 4294966784  ;;  %v46_v0 = vld [vmem:[#allocation5 + $0x18] sm:$0xff]  ;;  %v45_v1 = vld [vmem:[#allocation5 + $0x10] sm:$0xff]  ;;  %vm47_vm0 = vcmask 261120   ;;  %s178_s0 = smov [#allocation7]  }
   0xc   :  { %63 = vmatpush.msra.mxu0 %v46_v0  ;;  %v44_v2 = vld [vmem:[#allocation5 + $0x8] sm:$0xff]  ;;  %v43_v3 = vld [vmem:[#allocation5] sm:$0xff]  ;;  %v42_v4 = vld [vmem:[#allocation2] sm:$0xff]  ;;  %s77_s1 = sshll.u32 %s178_s0, 4  ;;  %s79_s23 = sshll.u32 %s205_s2, 4  ;;  %s78_s1 = int_to_ptr.vmem [resolvable:$true] %s77_s1  ;;  %s80_s23 = int_to_ptr.hbm [resolvable:$true] %s79_s23 }
   0xe   :  { %64 = vmatpush.msra.mxu0 %v45_v1 }
  0x10   :  { %65 = vmatpush.msra.mxu0 %v44_v2 }
  0x12   :  { %66 = vmatpush.msra.mxu0 %v43_v3 }
  0x13   :  { %90 = vmatmul.msk.f32.vlgmr.msra.gmra.mxu0 %vm47_vm0, %v42_v4 }
  0x90   :  { %v68_v5 = vpop.f32.mrf.mxu0 }
  0x91   :  { %71 = vst [vmem:[#allocation7] sm:$0xff] %v68_v5 }
  0x92   :  { %82 = dma.vmem_to_hbm [thread:$0]  %s78_s1, 128, %s80_s23, [#allocation4]  }
  0x93   :  { %172 = dma.done.wait [#allocation4], 128  }
  0x94   :  { %173 = vsyncadd [#allocation4], 4294967168 }
  0x95   :  { %87 = vsyncpa [#allocation3], 1 }
  0x96   :  { %88 = vsyncpa [#allocation6], 1 }
  0x97   :  { %89 = vsyncpa [#allocation4], 1 }

</bundles_post_ra>
